<compile_context>
chip_gen: v7x
topology: tpu7x:2x2x1
jax: 0.10.0
libtpu: 0.0.40
codegen_flags: <defaults>
</compile_context>

<pallas_src>
import functools

import jax
import jax.numpy as jnp
from jax import lax
from jax.experimental import pallas as pl
from jax.experimental.pallas import tpu as pltpu


_LANE = 512                          # lane-dense tile width (multiple of 128)
_SUBLANE = 8
_MIN_TILE = _SUBLANE * _LANE         # minimal (8,512) tile = 4096 elements
_MAX_BLOCK_BYTES = 2 * 1024 * 1024   # per-layer per-buffer target (~HBM roofline)


def _vmem_budget_bytes():
    """Generation-aware scoped-VMEM budget (half of physical capacity)."""
    try:
        cap = int(pltpu.get_tpu_info().vmem_capacity_bytes)
    except Exception:
        cap = 64 * 1024 * 1024       # conservative fallback = v7x physical VMEM
    return cap // 2                  # 64 MiB on v5e/v6e, 32 MiB on v7x


def _prep_layers(layers):
    """Flatten each layer and view it as (rows, _LANE).

    Pads (with zeros) only up to the next multiple of the minimal (8, 512)
    tile -- zero padding is exact for this reduction (std of identical zeros
    is 0) and the mean divides by the true element count.  No padding to a
    block_rows multiple: ragged edge blocks are masked in-kernel.
    """
    flat = [jnp.ravel(x) for x in layers]
    n_valid = int(flat[0].shape[0])
    n_pad = -(-n_valid // _MIN_TILE) * _MIN_TILE
    tiles = []
    for f in flat:
        if n_pad != n_valid:
            f = jnp.pad(f, (0, n_pad - n_valid))
        tiles.append(f.reshape(n_pad // _LANE, _LANE))
    return tiles, n_pad // _LANE, n_valid


def _choose_block_rows(rows, n_layers_total, itemsize, budget):
    """Largest 8-multiple block_rows s.t. 2 buffers x all layers fit the budget,
    capped at ~2 MiB per layer per buffer and at the array's own row count."""
    per_buf = min(_MAX_BLOCK_BYTES,
                  max(int(0.7 * budget) // max(2 * n_layers_total, 1),
                      _MIN_TILE * itemsize))
    br = max((per_buf // (_LANE * itemsize)) // _SUBLANE * _SUBLANE, _SUBLANE)
    return min(br, rows)


def _fused_moe_std_mean_kernel(*refs, n_enc, n_dec, rows_enc, rows_dec,
                               n_valid_enc, n_valid_dec,
                               block_rows_enc, block_rows_dec, coeff):
    """refs = (enc_0..enc_{Le-1}, dec_0..dec_{Ld-1}, out_smem, acc_enc, acc_dec)."""
    enc_refs = refs[:n_enc]
    dec_refs = refs[n_enc:n_enc + n_dec]
    out_ref = refs[n_enc + n_dec]
    acc_enc = refs[n_enc + n_dec + 1]
    acc_dec = refs[n_enc + n_dec + 2]

    step = pl.program_id(0)

    @pl.when(step == 0)
    def _init():
        acc_enc[...] = jnp.zeros_like(acc_enc)
        acc_dec[...] = jnp.zeros_like(acc_dec)

    # Hoisted once (JAX does not CSE broadcasts inside loops).
    row_iota = lax.broadcasted_iota(jnp.int32, (_SUBLANE, _LANE), 0)

    def accumulate(x_refs, acc_ref, block_rows, rows_valid):
        n_layers = len(x_refs)
        inv_l = jnp.float32(1.0 / n_layers)
        inv_ddof = jnp.float32(1.0 / max(n_layers - 1, 1))
        base_row = step * block_rows

        # Strip-mine in 8-row strips so the per-strip moment accumulators stay
        # vreg-resident; the cross-sublane reduce happens once, at finalize.
        @pl.loop(0, block_rows // _SUBLANE)
        def _(strip):
            r0 = pl.multiple_of(strip * _SUBLANE, _SUBLANE)
            # Shifted single-pass moments about layer 0 (numerically safer
            # than raw sum/sumsq when the cross-layer mean dominates).
            x0 = x_refs[0][pl.ds(r0, _SUBLANE), :].astype(jnp.float32)
            s = jnp.zeros_like(x0)
            s2 = jnp.zeros_like(x0)
            for r in x_refs[1:]:
                d = r[pl.ds(r0, _SUBLANE), :].astype(jnp.float32) - x0
                s = s + d
                s2 = s2 + d * d
            var = (s2 - (s * s) * inv_l) * inv_ddof
            var = jnp.maximum(var, jnp.float32(0.0))      # guard tiny negative
            if n_layers <= 1:
                var = var + jnp.float32(jnp.nan)          # torch std of 1 sample
            std = jnp.sqrt(var)
            # Mask rows past the true extent (ragged edge block / clamped
            # revisit of the last block contains undefined or stale data).
            g_row = base_row + r0 + row_iota
            std = jnp.where(g_row < rows_valid, std, jnp.float32(0.0))
            acc_ref[...] += std

    accumulate(enc_refs, acc_enc, block_rows_enc, rows_enc)
    accumulate(dec_refs, acc_dec, block_rows_dec, rows_dec)

    @pl.when(step == pl.num_programs(0) - 1)
    def _finalize():
        # Divide by the TRUE element counts (zero padding contributed 0).
        enc_mean = jnp.sum(acc_enc[...]) * jnp.float32(1.0 / n_valid_enc)
        dec_mean = jnp.sum(acc_dec[...]) * jnp.float32(1.0 / n_valid_dec)
        out_ref[0] = (enc_mean + dec_mean) * jnp.float32(0.5 * coeff)
        out_ref[1] = enc_mean
        out_ref[2] = dec_mean


def transformer_moe_loss(encoder_gating_variances, decoder_gating_variances,
                         diversity_loss_coefficient=0.0, *,
                         block_rows_enc=None, block_rows_dec=None):
    """Pallas implementation of TransformerMoELoss.forward.

    Returns (moe_diversity_loss, encoder_var_mean, decoder_var_mean).
    """
    if diversity_loss_coefficient <= 0:
        z = jnp.float32(0.0)
        return z, z, z
    if not encoder_gating_variances or not decoder_gating_variances:
        raise ValueError("need at least one gating-variance tensor per side")

    enc_tiles, rows_e, n_valid_e = _prep_layers(encoder_gating_variances)
    dec_tiles, rows_d, n_valid_d = _prep_layers(decoder_gating_variances)
    n_enc, n_dec = len(enc_tiles), len(dec_tiles)

    itemsize = max(jnp.dtype(t.dtype).itemsize for t in enc_tiles + dec_tiles)
    budget = _vmem_budget_bytes()
    if block_rows_enc is None:
        block_rows_enc = _choose_block_rows(rows_e, n_enc + n_dec, itemsize, budget)
    if block_rows_dec is None:
        block_rows_dec = _choose_block_rows(rows_d, n_enc + n_dec, itemsize, budget)
    assert block_rows_enc % _SUBLANE == 0 and block_rows_dec % _SUBLANE == 0

    steps_e = -(-rows_e // block_rows_enc)
    steps_d = -(-rows_d // block_rows_dec)
    grid = max(steps_e, steps_d)

    def layer_spec(block_rows, n_steps):
        last = n_steps - 1
        # Clamp: once this side's rows are exhausted the last block is
        # revisited and its (masked) contribution is zero.
        return pl.BlockSpec((block_rows, _LANE),
                            lambda i, last=last: (jnp.minimum(i, last), 0))

    in_specs = ([layer_spec(block_rows_enc, steps_e)] * n_enc
                + [layer_spec(block_rows_dec, steps_d)] * n_dec)

    kernel = functools.partial(
        _fused_moe_std_mean_kernel,
        n_enc=n_enc, n_dec=n_dec, rows_enc=rows_e, rows_dec=rows_d,
        n_valid_enc=n_valid_e, n_valid_dec=n_valid_d,
        block_rows_enc=block_rows_enc, block_rows_dec=block_rows_dec,
        coeff=float(diversity_loss_coefficient))

    out = pl.pallas_call(
        kernel,
        out_shape=jax.ShapeDtypeStruct((3,), jnp.float32),
        grid_spec=pltpu.PrefetchScalarGridSpec(
            num_scalar_prefetch=0,
            grid=(grid,),
            in_specs=in_specs,
            out_specs=pl.BlockSpec(memory_space=pltpu.MemorySpace.SMEM),
            scratch_shapes=[pltpu.VMEM((_SUBLANE, _LANE), jnp.float32),
                            pltpu.VMEM((_SUBLANE, _LANE), jnp.float32)],
        ),
        compiler_params=pltpu.CompilerParams(
            dimension_semantics=("arbitrary",),       # carried accumulators
            vmem_limit_bytes=budget),
    )(*(enc_tiles + dec_tiles))

    return out[0], out[1], out[2]


if __name__ == "__main__":
    key = jax.random.PRNGKey(0)

    # Small gating variances: 4 encoder layers, 3 decoder layers, each (2, 8).
    L_ENC, L_DEC, B, S = 4, 3, 2, 8
    k_enc, k_dec = jax.random.split(key)
    enc_list = [jax.random.uniform(jax.random.fold_in(k_enc, i), (B, S),
                                   dtype=jnp.float32) for i in range(L_ENC)]
    dec_list = [jax.random.uniform(jax.random.fold_in(k_dec, i), (B, S),
                                   dtype=jnp.float32) for i in range(L_DEC)]

    coeff = 0.1
    loss, enc_var, dec_var = transformer_moe_loss(enc_list, dec_list, coeff)
    loss = jax.block_until_ready(loss)

    # Reference (pure JAX, torch semantics: std over layers, ddof=1).
    enc_ref = jnp.mean(jnp.std(jnp.stack(enc_list), axis=0, ddof=1))
    dec_ref = jnp.mean(jnp.std(jnp.stack(dec_list), axis=0, ddof=1))
    loss_ref = (enc_ref + dec_ref) / 2 * coeff
    assert jnp.allclose(loss, loss_ref, rtol=1e-4, atol=1e-6)
    assert jnp.allclose(enc_var, enc_ref, rtol=1e-4, atol=1e-6)
    assert jnp.allclose(dec_var, dec_ref, rtol=1e-4, atol=1e-6)

    # Multi-step grid + ragged edge block + clamped/masked shorter side:
    #   enc per layer (3, 50, 60) = 9000 elems -> 24 rows; block_rows_enc=16
    #     -> 2 steps, edge block rows 24..31 are OOB (mask path);
    #   dec per layer (40, 40) = 1600 elems -> 8 rows; 1 real step, step 1 is
    #     a clamped revisit that is fully masked.
    big_enc = [jax.random.uniform(jax.random.fold_in(key, 100 + i), (3, 50, 60),
                                  dtype=jnp.float32) for i in range(4)]
    big_dec = [jax.random.uniform(jax.random.fold_in(key, 200 + i), (40, 40),
                                  dtype=jnp.float32) for i in range(3)]
    loss2, enc2, dec2 = transformer_moe_loss(
        big_enc, big_dec, coeff, block_rows_enc=16, block_rows_dec=8)
    loss2 = jax.block_until_ready(loss2)
    enc2_ref = jnp.mean(jnp.std(jnp.stack(big_enc), axis=0, ddof=1))
    dec2_ref = jnp.mean(jnp.std(jnp.stack(big_dec), axis=0, ddof=1))
    loss2_ref = (enc2_ref + dec2_ref) / 2 * coeff
    assert jnp.allclose(enc2, enc2_ref, rtol=1e-4, atol=1e-6)
    assert jnp.allclose(dec2, dec2_ref, rtol=1e-4, atol=1e-6)
    assert jnp.allclose(loss2, loss2_ref, rtol=1e-4, atol=1e-6)

    # Zero-coefficient branch (matches torch: returns zeros, no kernel run).
    z0, z1, z2 = transformer_moe_loss(enc_list, dec_list, 0.0)
    assert float(z0) == 0.0 and float(z1) == 0.0 and float(z2) == 0.0

    print("KERNEL_OK")
</pallas_src>

<mosaic_0001>
module attributes {stable_mosaic.version = 11 : i64} {
  func.func @_fused_moe_std_mean_kernel(%arg0: i32, %arg1: memref<8x512xf32, #tpu.memory_space<vmem>>, %arg2: memref<8x512xf32, #tpu.memory_space<vmem>>, %arg3: memref<8x512xf32, #tpu.memory_space<vmem>>, %arg4: memref<8x512xf32, #tpu.memory_space<vmem>>, %arg5: memref<8x512xf32, #tpu.memory_space<vmem>>, %arg6: memref<8x512xf32, #tpu.memory_space<vmem>>, %arg7: memref<8x512xf32, #tpu.memory_space<vmem>>, %arg8: memref<3xf32, #tpu.memory_space<smem>>, %arg9: memref<8x512xf32, #tpu.memory_space<vmem>>, %arg10: memref<8x512xf32, #tpu.memory_space<vmem>>) attributes {dimension_semantics = [#tpu.dimension_semantics<arbitrary>], iteration_bounds = array<i64: 1>, scalar_prefetch = 0 : i64, scratch_operands = 2 : i64, tpu.core_type = #tpu.core_type<tc>, window_params = [{transform_indices = @transform_0, window_bounds = array<i64: 8, 512>}, {transform_indices = @transform_1, window_bounds = array<i64: 8, 512>}, {transform_indices = @transform_2, window_bounds = array<i64: 8, 512>}, {transform_indices = @transform_3, window_bounds = array<i64: 8, 512>}, {transform_indices = @transform_4, window_bounds = array<i64: 8, 512>}, {transform_indices = @transform_5, window_bounds = array<i64: 8, 512>}, {transform_indices = @transform_6, window_bounds = array<i64: 8, 512>}, {transform_indices = @transform_7, window_bounds = array<i64: 3>}]} {
    %c0_i32 = arith.constant 0 : i32
    %0 = arith.cmpi eq, %arg0, %c0_i32 : i32
    %1 = arith.extui %0 : i1 to i32
    %c0_i32_0 = arith.constant 0 : i32
    %2 = arith.cmpi ne, %1, %c0_i32_0 : i32
    scf.if %2 {
      %cst_40 = arith.constant 0.000000e+00 : f32
      %93 = vector.broadcast %cst_40 : f32 to vector<8x512xf32>
      %c0_41 = arith.constant 0 : index
      %c0_42 = arith.constant 0 : index
      %94 = vector.load %arg9[%c0_41, %c0_42] : memref<8x512xf32, #tpu.memory_space<vmem>>, vector<8x512xf32>
      tpu.vector_store %arg9[%c0_41, %c0_42], %93 {strides = array<i32>} : memref<8x512xf32, #tpu.memory_space<vmem>>, vector<8x512xf32>,
      %cst_43 = arith.constant 0.000000e+00 : f32
      %95 = vector.broadcast %cst_43 : f32 to vector<8x512xf32>
      %c0_44 = arith.constant 0 : index
      %c0_45 = arith.constant 0 : index
      %96 = vector.load %arg10[%c0_44, %c0_45] : memref<8x512xf32, #tpu.memory_space<vmem>>, vector<8x512xf32>
      tpu.vector_store %arg10[%c0_44, %c0_45], %95 {strides = array<i32>} : memref<8x512xf32, #tpu.memory_space<vmem>>, vector<8x512xf32>,
    } else {
    }
    %3 = tpu.iota {dimensions = array<i32: 0>} : vector<8x512xi32>
    %c8_i32 = arith.constant 8 : i32
    %4 = arith.muli %arg0, %c8_i32 : i32
    %cst = arith.constant 2.500000e-01 : f32
    %cst_1 = arith.constant 0.333333343 : f32
    %c0_i32_2 = arith.constant 0 : i32
    %c1_i32 = arith.constant 1 : i32
    %5 = arith.muli %c0_i32_2, %c1_i32 : i32
    %c0_i32_3 = arith.constant 0 : i32
    %6 = arith.addi %c0_i32_3, %5 : i32
    %c8_i32_4 = arith.constant 8 : i32
    %7 = arith.muli %6, %c8_i32_4 : i32
    %8 = tpu.assume_multiple %7, 8 : i32
    %9 = arith.index_cast %8 : i32 to index
    %c0 = arith.constant 0 : index
    %10 = vector.load %arg1[%9, %c0] : memref<8x512xf32, #tpu.memory_space<vmem>>, vector<8x512xf32>
    %cst_5 = arith.constant 0.000000e+00 : f32
    %11 = vector.broadcast %cst_5 : f32 to vector<8x512xf32>
    %cst_6 = arith.constant 0.000000e+00 : f32
    %12 = vector.broadcast %cst_6 : f32 to vector<8x512xf32>
    %13 = arith.index_cast %8 : i32 to index
    %c0_7 = arith.constant 0 : index
    %14 = vector.load %arg2[%13, %c0_7] : memref<8x512xf32, #tpu.memory_space<vmem>>, vector<8x512xf32>
    %15 = arith.subf %14, %10 : vector<8x512xf32>
    %16 = arith.addf %11, %15 : vector<8x512xf32>
    %17 = arith.mulf %15, %15 : vector<8x512xf32>
    %18 = arith.addf %12, %17 : vector<8x512xf32>
    %19 = arith.index_cast %8 : i32 to index
    %c0_8 = arith.constant 0 : index
    %20 = vector.load %arg3[%19, %c0_8] : memref<8x512xf32, #tpu.memory_space<vmem>>, vector<8x512xf32>
    %21 = arith.subf %20, %10 : vector<8x512xf32>
    %22 = arith.addf %16, %21 : vector<8x512xf32>
    %23 = arith.mulf %21, %21 : vector<8x512xf32>
    %24 = arith.addf %18, %23 : vector<8x512xf32>
    %25 = arith.index_cast %8 : i32 to index
    %c0_9 = arith.constant 0 : index
    %26 = vector.load %arg4[%25, %c0_9] : memref<8x512xf32, #tpu.memory_space<vmem>>, vector<8x512xf32>
    %27 = arith.subf %26, %10 : vector<8x512xf32>
    %28 = arith.addf %22, %27 : vector<8x512xf32>
    %29 = arith.mulf %27, %27 : vector<8x512xf32>
    %30 = arith.addf %24, %29 : vector<8x512xf32>
    %31 = arith.mulf %28, %28 : vector<8x512xf32>
    %32 = vector.broadcast %cst : f32 to vector<8x512xf32>
    %33 = arith.mulf %31, %32 : vector<8x512xf32>
    %34 = arith.subf %30, %33 : vector<8x512xf32>
    %35 = vector.broadcast %cst_1 : f32 to vector<8x512xf32>
    %36 = arith.mulf %34, %35 : vector<8x512xf32>
    %cst_10 = arith.constant 0.000000e+00 : f32
    %37 = vector.broadcast %cst_10 : f32 to vector<8x512xf32>
    %38 = arith.maximumf %36, %37 : vector<8x512xf32>
    %39 = math.sqrt %38 : vector<8x512xf32>
    %40 = arith.addi %4, %8 : i32
    %41 = vector.broadcast %40 : i32 to vector<8x512xi32>
    %42 = arith.addi %41, %3 : vector<8x512xi32>
    %c8_i32_11 = arith.constant 8 : i32
    %43 = vector.broadcast %c8_i32_11 : i32 to vector<8x512xi32>
    %44 = arith.cmpi slt, %42, %43 : vector<8x512xi32>
    %cst_12 = arith.constant 0.000000e+00 : f32
    %45 = vector.broadcast %cst_12 : f32 to vector<8x512xf32>
    %46 = arith.select %44, %39, %45 : vector<8x512xi1>, vector<8x512xf32>
    %c0_13 = arith.constant 0 : index
    %c0_14 = arith.constant 0 : index
    %47 = vector.load %arg9[%c0_13, %c0_14] : memref<8x512xf32, #tpu.memory_space<vmem>>, vector<8x512xf32>
    %48 = arith.addf %47, %46 : vector<8x512xf32>
    %c0_15 = arith.constant 0 : index
    %c0_16 = arith.constant 0 : index
    %49 = vector.load %arg9[%c0_15, %c0_16] : memref<8x512xf32, #tpu.memory_space<vmem>>, vector<8x512xf32>
    tpu.vector_store %arg9[%c0_15, %c0_16], %48 {strides = array<i32>} : memref<8x512xf32, #tpu.memory_space<vmem>>, vector<8x512xf32>,
    %c1_i32_17 = arith.constant 1 : i32
    %c8_i32_18 = arith.constant 8 : i32
    %50 = arith.muli %arg0, %c8_i32_18 : i32
    %cst_19 = arith.constant 0.333333343 : f32
    %cst_20 = arith.constant 5.000000e-01 : f32
    %c0_i32_21 = arith.constant 0 : i32
    %c1_i32_22 = arith.constant 1 : i32
    %51 = arith.muli %c0_i32_21, %c1_i32_22 : i32
    %c0_i32_23 = arith.constant 0 : i32
    %52 = arith.addi %c0_i32_23, %51 : i32
    %c8_i32_24 = arith.constant 8 : i32
    %53 = arith.muli %52, %c8_i32_24 : i32
    %54 = tpu.assume_multiple %53, 8 : i32
    %55 = arith.index_cast %54 : i32 to index
    %c0_25 = arith.constant 0 : index
    %56 = vector.load %arg5[%55, %c0_25] : memref<8x512xf32, #tpu.memory_space<vmem>>, vector<8x512xf32>
    %cst_26 = arith.constant 0.000000e+00 : f32
    %57 = vector.broadcast %cst_26 : f32 to vector<8x512xf32>
    %cst_27 = arith.constant 0.000000e+00 : f32
    %58 = vector.broadcast %cst_27 : f32 to vector<8x512xf32>
    %59 = arith.index_cast %54 : i32 to index
    %c0_28 = arith.constant 0 : index
    %60 = vector.load %arg6[%59, %c0_28] : memref<8x512xf32, #tpu.memory_space<vmem>>, vector<8x512xf32>
    %61 = arith.subf %60, %56 : vector<8x512xf32>
    %62 = arith.addf %57, %61 : vector<8x512xf32>
    %63 = arith.mulf %61, %61 : vector<8x512xf32>
    %64 = arith.addf %58, %63 : vector<8x512xf32>
    %65 = arith.index_cast %54 : i32 to index
    %c0_29 = arith.constant 0 : index
    %66 = vector.load %arg7[%65, %c0_29] : memref<8x512xf32, #tpu.memory_space<vmem>>, vector<8x512xf32>
    %67 = arith.subf %66, %56 : vector<8x512xf32>
    %68 = arith.addf %62, %67 : vector<8x512xf32>
    %69 = arith.mulf %67, %67 : vector<8x512xf32>
    %70 = arith.addf %64, %69 : vector<8x512xf32>
    %71 = arith.mulf %68, %68 : vector<8x512xf32>
    %72 = vector.broadcast %cst_19 : f32 to vector<8x512xf32>
    %73 = arith.mulf %71, %72 : vector<8x512xf32>
    %74 = arith.subf %70, %73 : vector<8x512xf32>
    %75 = vector.broadcast %cst_20 : f32 to vector<8x512xf32>
    %76 = arith.mulf %74, %75 : vector<8x512xf32>
    %cst_30 = arith.constant 0.000000e+00 : f32
    %77 = vector.broadcast %cst_30 : f32 to vector<8x512xf32>
    %78 = arith.maximumf %76, %77 : vector<8x512xf32>
    %79 = math.sqrt %78 : vector<8x512xf32>
    %80 = arith.addi %50, %54 : i32
    %81 = vector.broadcast %80 : i32 to vector<8x512xi32>
    %82 = arith.addi %81, %3 : vector<8x512xi32>
    %c8_i32_31 = arith.constant 8 : i32
    %83 = vector.broadcast %c8_i32_31 : i32 to vector<8x512xi32>
    %84 = arith.cmpi slt, %82, %83 : vector<8x512xi32>
    %cst_32 = arith.constant 0.000000e+00 : f32
    %85 = vector.broadcast %cst_32 : f32 to vector<8x512xf32>
    %86 = arith.select %84, %79, %85 : vector<8x512xi1>, vector<8x512xf32>
    %c0_33 = arith.constant 0 : index
    %c0_34 = arith.constant 0 : index
    %87 = vector.load %arg10[%c0_33, %c0_34] : memref<8x512xf32, #tpu.memory_space<vmem>>, vector<8x512xf32>
    %88 = arith.addf %87, %86 : vector<8x512xf32>
    %c0_35 = arith.constant 0 : index
    %c0_36 = arith.constant 0 : index
    %89 = vector.load %arg10[%c0_35, %c0_36] : memref<8x512xf32, #tpu.memory_space<vmem>>, vector<8x512xf32>
    tpu.vector_store %arg10[%c0_35, %c0_36], %88 {strides = array<i32>} : memref<8x512xf32, #tpu.memory_space<vmem>>, vector<8x512xf32>,
    %c1_i32_37 = arith.constant 1 : i32
    %c0_i32_38 = arith.constant 0 : i32
    %90 = arith.cmpi eq, %arg0, %c0_i32_38 : i32
    %91 = arith.extui %90 : i1 to i32
    %c0_i32_39 = arith.constant 0 : i32
    %92 = arith.cmpi ne, %91, %c0_i32_39 : i32
    scf.if %92 {
      %c0_40 = arith.constant 0 : index
      %c0_41 = arith.constant 0 : index
      %93 = vector.load %arg9[%c0_40, %c0_41] : memref<8x512xf32, #tpu.memory_space<vmem>>, vector<8x512xf32>
      %94 = vector.shape_cast %93 : vector<8x512xf32> to vector<1x8x512xf32>
      %cst_42 = arith.constant dense<0.000000e+00> : vector<1xf32>
      %95 = vector.multi_reduction <add>, %94, %cst_42 [1, 2] : vector<1x8x512xf32> to vector<1xf32>
      %96 = vector.shape_cast %95 : vector<1xf32> to vector<1x1x1xf32>
      %97 = vector.extract %96[0, 0, 0] : f32 from vector<1x1x1xf32>
      %cst_43 = arith.constant 6.250000e-02 : f32
      %98 = arith.mulf %97, %cst_43 : f32
      %c0_44 = arith.constant 0 : index
      %c0_45 = arith.constant 0 : index
      %99 = vector.load %arg10[%c0_44, %c0_45] : memref<8x512xf32, #tpu.memory_space<vmem>>, vector<8x512xf32>
      %100 = vector.shape_cast %99 : vector<8x512xf32> to vector<1x8x512xf32>
      %cst_46 = arith.constant dense<0.000000e+00> : vector<1xf32>
      %101 = vector.multi_reduction <add>, %100, %cst_46 [1, 2] : vector<1x8x512xf32> to vector<1xf32>
      %102 = vector.shape_cast %101 : vector<1xf32> to vector<1x1x1xf32>
      %103 = vector.extract %102[0, 0, 0] : f32 from vector<1x1x1xf32>
      %cst_47 = arith.constant 6.250000e-02 : f32
      %104 = arith.mulf %103, %cst_47 : f32
      %105 = arith.addf %98, %104 : f32
      %cst_48 = arith.constant 5.000000e-02 : f32
      %106 = arith.mulf %105, %cst_48 : f32
      %c0_49 = arith.constant 0 : index
      %107 = memref.load %arg8[%c0_49] : memref<3xf32, #tpu.memory_space<smem>>
      memref.store %106, %arg8[%c0_49] : memref<3xf32, #tpu.memory_space<smem>>
      %c1 = arith.constant 1 : index
      %108 = memref.load %arg8[%c1] : memref<3xf32, #tpu.memory_space<smem>>
      memref.store %98, %arg8[%c1] : memref<3xf32, #tpu.memory_space<smem>>
      %c2 = arith.constant 2 : index
      %109 = memref.load %arg8[%c2] : memref<3xf32, #tpu.memory_space<smem>>
      memref.store %104, %arg8[%c2] : memref<3xf32, #tpu.memory_space<smem>>
    } else {
    }
    return
  }
  func.func @transform_0(%arg0: i32) -> (i32, i32) {
    %c0_i32 = arith.constant 0 : i32
    %0 = arith.minsi %arg0, %c0_i32 : i32
    %c0_i32_0 = arith.constant 0 : i32
    %c0_i32_1 = arith.constant 0 : i32
    return %0, %c0_i32_0 : i32, i32
  }
  func.func @transform_1(%arg0: i32) -> (i32, i32) {
    %c0_i32 = arith.constant 0 : i32
    %0 = arith.minsi %arg0, %c0_i32 : i32
    %c0_i32_0 = arith.constant 0 : i32
    %c0_i32_1 = arith.constant 0 : i32
    return %0, %c0_i32_0 : i32, i32
  }
  func.func @transform_2(%arg0: i32) -> (i32, i32) {
    %c0_i32 = arith.constant 0 : i32
    %0 = arith.minsi %arg0, %c0_i32 : i32
    %c0_i32_0 = arith.constant 0 : i32
    %c0_i32_1 = arith.constant 0 : i32
    return %0, %c0_i32_0 : i32, i32
  }
  func.func @transform_3(%arg0: i32) -> (i32, i32) {
    %c0_i32 = arith.constant 0 : i32
    %0 = arith.minsi %arg0, %c0_i32 : i32
    %c0_i32_0 = arith.constant 0 : i32
    %c0_i32_1 = arith.constant 0 : i32
    return %0, %c0_i32_0 : i32, i32
  }
  func.func @transform_4(%arg0: i32) -> (i32, i32) {
    %c0_i32 = arith.constant 0 : i32
    %0 = arith.minsi %arg0, %c0_i32 : i32
    %c0_i32_0 = arith.constant 0 : i32
    %c0_i32_1 = arith.constant 0 : i32
    return %0, %c0_i32_0 : i32, i32
  }
  func.func @transform_5(%arg0: i32) -> (i32, i32) {
    %c0_i32 = arith.constant 0 : i32
    %0 = arith.minsi %arg0, %c0_i32 : i32
    %c0_i32_0 = arith.constant 0 : i32
    %c0_i32_1 = arith.constant 0 : i32
    return %0, %c0_i32_0 : i32, i32
  }
  func.func @transform_6(%arg0: i32) -> (i32, i32) {
    %c0_i32 = arith.constant 0 : i32
    %0 = arith.minsi %arg0, %c0_i32 : i32
    %c0_i32_0 = arith.constant 0 : i32
    %c0_i32_1 = arith.constant 0 : i32
    return %0, %c0_i32_0 : i32, i32
  }
  func.func @transform_7(%arg0: i32) -> i32 {
    %c0_i32 = arith.constant 0 : i32
    %c0_i32_0 = arith.constant 0 : i32
    return %c0_i32 : i32
  }
}

</mosaic_0001>

<bundles_post_ra>
// kernel: tpu_custom_call.1
= control target key start
LH: loop header
LB: loop body
LE: loop exit
PB: predicated region body
PF: predicated region fallthrough
CT: control target
= control target key end

     0   :  { %12 = vsyncpa [#allocation5], 0  ;;  %s835_s0 = inlined_call_operand.hbm [shape: f32[8,512], index: 0, kind: input, shape index: {}]   ;;  %s836_s1 = inlined_call_operand.hbm [shape: f32[8,512], index: 1, kind: input, shape index: {}]   ;;  %s837_s2 = inlined_call_operand.hbm [shape: f32[8,512], index: 2, kind: input, shape index: {}]   ;;  %s838_s3 = inlined_call_operand.hbm [shape: f32[8,512], index: 3, kind: input, shape index: {}]   ;;  %s839_s4 = inlined_call_operand.hbm [shape: f32[8,512], index: 4, kind: input, shape index: {}]   ;;  %s840_s5 = inlined_call_operand.hbm [shape: f32[8,512], index: 5, kind: input, shape index: {}]   ;;  %s841_s6 = inlined_call_operand.hbm [shape: f32[8,512], index: 6, kind: input, shape index: {}]   ;;  %s842_s7 = inlined_call_operand.hbm [shape: f32[3], index: 7, kind: output, shape index: {}]  }
   0x1   :  { %13 = vsyncpa [#allocation8], 0 }
   0x2   :  { %14 = vsyncpa [#allocation11], 0 }
   0x3   :  { %15 = vsyncpa [#allocation14], 0 }
   0x4   :  { %16 = vsyncpa [#allocation6], 0  ;;  %s642_s24 = smov [#allocation7]   ;;  %s643_s26 = smov [#allocation10]  }
   0x5   :  { %s33_s25 = sshll.u32 %s642_s24, 4  ;;  %s53_s27 = sshll.u32 %s643_s26, 4  ;;  %s34_s25 = int_to_ptr.vmem [resolvable:$true] %s33_s25  ;;  %s54_s27 = int_to_ptr.vmem [resolvable:$true] %s53_s27 }
   0x6   :  { %s468_s30 = scalar_lea.hbm %s836_s1, 512 }
   0x7   :  { %p469_p0 = scmp.ne.s32.totalorder %s836_s1, %s468_s30  ;;  %p472_p1 = scmp.lt.u32.totalorder %s468_s30, %s836_s1 }
   0x9   :  { %p474_p2 = pnand %p472_p1, %p469_p0 }
   0xb   :  { %477 = shalt.err (!%p474_p2)
}
   0xc   :  { %s478_s12 = scalar_lea.vmem %s34_s25, 512  ;;  %p483_p4 = scmp.lt.s32.totalorder %s34_s25, %s34_s25 }
   0xd   :  { %p479_p3 = scmp.ne.s32.totalorder %s34_s25, %s478_s12  ;;  %p484_p5 = scmp.lt.s32.totalorder %s478_s12, %s478_s12 }
   0xf   :  { %p485_p6 = por %p484_p5, %p483_p4 }
  0x11   :  { %p486_p7 = pnand %p485_p6, %p479_p3 }
  0x13   :  { %489 = shalt.err (!%p486_p7)
}
  0x14   :  { %36 = dma.hbm_to_vmem [thread:$0]  %s836_s1, 512, %s34_s25, [#allocation8]  }
  0x15   :  { %s490_s17 = scalar_lea.hbm %s838_s3, 512 }
  0x16   :  { %p491_p8 = scmp.ne.s32.totalorder %s838_s3, %s490_s17  ;;  %p494_p9 = scmp.lt.u32.totalorder %s490_s17, %s838_s3 }
  0x18   :  { %p496_p10 = pnand %p494_p9, %p491_p8 }
  0x1a   :  { %499 = shalt.err (!%p496_p10)
}
  0x1b   :  { %s500_s22 = scalar_lea.vmem %s54_s27, 512  ;;  %p505_p12 = scmp.lt.s32.totalorder %s54_s27, %s54_s27 }
  0x1c   :  { %p501_p11 = scmp.ne.s32.totalorder %s54_s27, %s500_s22  ;;  %p506_p13 = scmp.lt.s32.totalorder %s500_s22, %s500_s22 }
  0x1e   :  { %p507_p0 = por %p506_p13, %p505_p12 }
  0x20   :  { %p508_p1 = pnand %p507_p0, %p501_p11 }
  0x22   :  { %511 = shalt.err (!%p508_p1)
}
  0x23   :  { %56 = dma.hbm_to_vmem [thread:$0]  %s838_s3, 512, %s54_s27, [#allocation11]  }
  0x24   :  { %s644_s24 = smov [#allocation13]   ;;  %s645_s26 = smov [#allocation4]  }
  0x25   :  { %s73_s25 = sshll.u32 %s644_s24, 4  ;;  %s23_s28 = sshll.u32 %s645_s26, 4  ;;  %s74_s25 = int_to_ptr.vmem [resolvable:$true] %s73_s25  ;;  %s24_s28 = int_to_ptr.vmem [resolvable:$true] %s23_s28 }
  0x26   :  { %s512_s8 = scalar_lea.hbm %s840_s5, 512 }
  0x27   :  { %p513_p2 = scmp.ne.s32.totalorder %s840_s5, %s512_s8  ;;  %p516_p3 = scmp.lt.u32.totalorder %s512_s8, %s840_s5 }
  0x29   :  { %p518_p4 = pnand %p516_p3, %p513_p2 }
  0x2b   :  { %521 = shalt.err (!%p518_p4)
}
  0x2c   :  { %s522_s3 = scalar_lea.vmem %s74_s25, 512  ;;  %p527_p6 = scmp.lt.s32.totalorder %s74_s25, %s74_s25 }
  0x2d   :  { %p523_p5 = scmp.ne.s32.totalorder %s74_s25, %s522_s3  ;;  %p528_p7 = scmp.lt.s32.totalorder %s522_s3, %s522_s3 }
  0x2f   :  { %p529_p8 = por %p528_p7, %p527_p6 }
  0x31   :  { %p530_p9 = pnand %p529_p8, %p523_p5 }
  0x33   :  { %533 = shalt.err (!%p530_p9)
}
  0x34   :  { %76 = dma.hbm_to_vmem [thread:$0]  %s840_s5, 512, %s74_s25, [#allocation14]  }
  0x35   :  { %s534_s16 = scalar_lea.hbm %s835_s0, 512 }
  0x36   :  { %p535_p10 = scmp.ne.s32.totalorder %s835_s0, %s534_s16  ;;  %p538_p11 = scmp.lt.u32.totalorder %s534_s16, %s835_s0 }
  0x38   :  { %p540_p12 = pnand %p538_p11, %p535_p10 }
  0x3a   :  { %543 = shalt.err (!%p540_p12)
}
  0x3b   :  { %s544_s21 = scalar_lea.vmem %s24_s28, 512  ;;  %p549_p0 = scmp.lt.s32.totalorder %s24_s28, %s24_s28 }
  0x3c   :  { %p545_p13 = scmp.ne.s32.totalorder %s24_s28, %s544_s21  ;;  %p550_p1 = scmp.lt.s32.totalorder %s544_s21, %s544_s21 }
  0x3e   :  { %p551_p2 = por %p550_p1, %p549_p0 }
  0x40   :  { %p552_p3 = pnand %p551_p2, %p545_p13 }
  0x42   :  { %555 = shalt.err (!%p552_p3)
}
  0x43   :  { %26 = dma.hbm_to_vmem [thread:$0]  %s835_s0, 512, %s24_s28, [#allocation5]  }
  0x44   :  { %s646_s1 = smov [#allocation9]   ;;  %s647_s24 = smov [#allocation12]  }
  0x45   :  { %s43_s23 = sshll.u32 %s646_s1, 4  ;;  %s63_s25 = sshll.u32 %s647_s24, 4  ;;  %s44_s23 = int_to_ptr.vmem [resolvable:$true] %s43_s23  ;;  %s64_s25 = int_to_ptr.vmem [resolvable:$true] %s63_s25 }
  0x46   :  { %s556_s30 = scalar_lea.hbm %s837_s2, 512 }
  0x47   :  { %p557_p4 = scmp.ne.s32.totalorder %s837_s2, %s556_s30  ;;  %p560_p5 = scmp.lt.u32.totalorder %s556_s30, %s837_s2 }
  0x49   :  { %p562_p6 = pnand %p560_p5, %p557_p4 }
  0x4b   :  { %565 = shalt.err (!%p562_p6)
}
  0x4c   :  { %s566_s0 = scalar_lea.vmem %s44_s23, 512  ;;  %p571_p8 = scmp.lt.s32.totalorder %s44_s23, %s44_s23 }
  0x4d   :  { %p567_p7 = scmp.ne.s32.totalorder %s44_s23, %s566_s0  ;;  %p572_p9 = scmp.lt.s32.totalorder %s566_s0, %s566_s0 }
  0x4f   :  { %p573_p10 = por %p572_p9, %p571_p8 }
  0x51   :  { %p574_p11 = pnand %p573_p10, %p567_p7 }
  0x53   :  { %577 = shalt.err (!%p574_p11)
}
  0x54   :  { %46 = dma.hbm_to_vmem [thread:$0]  %s837_s2, 512, %s44_s23, [#allocation8]  }
  0x55   :  { %s578_s13 = scalar_lea.hbm %s839_s4, 512 }
  0x56   :  { %p579_p12 = scmp.ne.s32.totalorder %s839_s4, %s578_s13  ;;  %p582_p13 = scmp.lt.u32.totalorder %s578_s13, %s839_s4 }
  0x58   :  { %p584_p0 = pnand %p582_p13, %p579_p12 }
  0x5a   :  { %587 = shalt.err (!%p584_p0)
}
  0x5b   :  { %s588_s18 = scalar_lea.vmem %s64_s25, 512  ;;  %p593_p2 = scmp.lt.s32.totalorder %s64_s25, %s64_s25 }
  0x5c   :  { %p589_p1 = scmp.ne.s32.totalorder %s64_s25, %s588_s18  ;;  %p594_p3 = scmp.lt.s32.totalorder %s588_s18, %s588_s18 }
  0x5e   :  { %p595_p4 = por %p594_p3, %p593_p2 }
  0x60   :  { %p596_p5 = pnand %p595_p4, %p589_p1 }
  0x62   :  { %599 = shalt.err (!%p596_p5)
}
  0x63   :  { %66 = dma.hbm_to_vmem [thread:$0]  %s839_s4, 512, %s64_s25, [#allocation11]  }
  0x64   :  { %s648_s20 = smov [#allocation15]   ;;  %s600_s1 = scalar_lea.hbm %s841_s6, 512 }
  0x65   :  { %s83_s21 = sshll.u32 %s648_s20, 4  ;;  %p601_p6 = scmp.ne.s32.totalorder %s841_s6, %s600_s1  ;;  %s84_s21 = int_to_ptr.vmem [resolvable:$true] %s83_s21 }
  0x66   :  { %p604_p7 = scmp.lt.u32.totalorder %s600_s1, %s841_s6 }
  0x68   :  { %p606_p8 = pnand %p604_p7, %p601_p6 }
  0x6a   :  { %609 = shalt.err (!%p606_p8)
}
  0x6b   :  { %s610_s30 = scalar_lea.vmem %s84_s21, 512  ;;  %p615_p10 = scmp.lt.s32.totalorder %s84_s21, %s84_s21 }
  0x6c   :  { %p611_p9 = scmp.ne.s32.totalorder %s84_s21, %s610_s30  ;;  %p616_p11 = scmp.lt.s32.totalorder %s610_s30, %s610_s30 }
  0x6e   :  { %p617_p12 = por %p616_p11, %p615_p10 }
  0x70   :  { %p618_p13 = pnand %p617_p12, %p611_p9 }
  0x72   :  { %621 = shalt.err (!%p618_p13)
}
  0x73   :  { %86 = dma.hbm_to_vmem [thread:$0]  %s841_s6, 512, %s84_s21, [#allocation14]  }
  0x74   :  { %632 = dma.done.wait [#allocation5], 512  }
  0x75   :  { %633 = vsyncadd [#allocation5], 4294966784 }
  0x76   :  { %634 = dma.done.wait [#allocation8], 1024  }
  0x77   :  { %635 = vsyncadd [#allocation8], 4294966272 }
  0x78   :  { %636 = dma.done.wait [#allocation11], 1024  }
  0x79   :  { %637 = vsyncadd [#allocation11], 4294966272 }
  0x7a   :  { %638 = dma.done.wait [#allocation14], 1024  }
  0x7b   :  { %639 = vsyncadd [#allocation14], 4294966272  ;;  %v126_v0 = vld [vmem:[#allocation4] sm:$0xff]  ;;  %v127_v1 = vld [vmem:[#allocation4 + $0x8] sm:$0xff]  ;;  %s622_s3 = scalar_lea.hbm %s842_s7, 16 }
  0x7c   :  { %v128_v2 = vld [vmem:[#allocation4 + $0x10] sm:$0xff]  ;;  %v129_v3 = vld [vmem:[#allocation4 + $0x18] sm:$0xff]  ;;  %v132_v4 = vld [vmem:[#allocation7] sm:$0xff]  ;;  %p623_p0 = scmp.ne.s32.totalorder %s842_s7, %s622_s3  ;;  %p626_p1 = scmp.lt.u32.totalorder %s622_s3, %s842_s7 }
  0x7d   :  { %v133_v5 = vld [vmem:[#allocation7 + $0x8] sm:$0xff]  ;;  %v134_v6 = vld [vmem:[#allocation7 + $0x10] sm:$0xff]  ;;  %v135_v7 = vld [vmem:[#allocation7 + $0x18] sm:$0xff]  ;;  %v136_v8 = vsub.f32 %v132_v4, %v126_v0 }
  0x7e   :  { %v137_v9 = vsub.f32 %v133_v5, %v127_v1  ;;  %v154_v10 = vld [vmem:[#allocation9] sm:$0xff]  ;;  %v138_v11 = vsub.f32 %v134_v6, %v128_v2  ;;  %v139_v12 = vsub.f32 %v135_v7, %v129_v3  ;;  %v155_v13 = vld [vmem:[#allocation9 + $0x8] sm:$0xff]  ;;  %v156_v14 = vld [vmem:[#allocation9 + $0x10] sm:$0xff]  ;;  %p628_p2 = pnand %p626_p1, %p623_p0 }
  0x7f   :  { %v157_v15 = vld [vmem:[#allocation9 + $0x18] sm:$0xff]  ;;  %v158_v16 = vsub.f32 %v154_v10, %v126_v0  ;;  %v144_v17 = vmul.f32 %v136_v8, %v136_v8  ;;  %v159_v19 = vsub.f32 %v155_v13, %v127_v1  ;;  %v160_v20 = vsub.f32 %v156_v14, %v128_v2  ;;  %v176_v21 = vld [vmem:[#allocation10] sm:$0xff]  ;;  %v177_v26 = vld [vmem:[#allocation10 + $0x8] sm:$0xff] }
  0x80   :  { %v145_v18 = vmul.f32 %v137_v9, %v137_v9  ;;  %v146_v22 = vmul.f32 %v138_v11, %v138_v11  ;;  %v147_v23 = vmul.f32 %v139_v12, %v139_v12  ;;  %v161_v24 = vsub.f32 %v157_v15, %v129_v3  ;;  %v178_v27 = vld [vmem:[#allocation10 + $0x10] sm:$0xff]  ;;  %v179_v32 = vld [vmem:[#allocation10 + $0x18] sm:$0xff]  ;;  %v266_v63 = vld [vmem:[#allocation12] sm:$0xff] }
  0x81   :  { %v162_v25 = vadd.f32 %v158_v16, %v136_v8  ;;  %v163_v28 = vadd.f32 %v159_v19, %v137_v9  ;;  %v164_v29 = vadd.f32 %v160_v20, %v138_v11  ;;  %v166_v30 = vmul.f32 %v158_v16, %v158_v16  ;;  %v273_v4 = vld [vmem:[#allocation13 + $0x8] sm:$0xff]  ;;  %v294_v5 = vld [vmem:[#allocation15] sm:$0xff]  ;;  %v268_v8 = vld [vmem:[#allocation12 + $0x10] sm:$0xff] }
  0x82   :  { %v167_v31 = vmul.f32 %v159_v19, %v159_v19  ;;  %v165_v33 = vadd.f32 %v161_v24, %v139_v12  ;;  %v168_v34 = vmul.f32 %v160_v20, %v160_v20  ;;  %v169_v35 = vmul.f32 %v161_v24, %v161_v24  ;;  %v274_v9 = vld [vmem:[#allocation13 + $0x10] sm:$0xff]  ;;  %v295_v10 = vld [vmem:[#allocation15 + $0x8] sm:$0xff]  ;;  %v269_v13 = vld [vmem:[#allocation12 + $0x18] sm:$0xff] }
  0x83   :  { %v180_v36 = vsub.f32 %v176_v21, %v126_v0  ;;  %v170_v37 = vadd.f32 %v166_v30, %v144_v17  ;;  %v181_v39 = vsub.f32 %v177_v26, %v127_v1  ;;  %v182_v40 = vsub.f32 %v178_v27, %v128_v2  ;;  %v272_v0 = vld [vmem:[#allocation13] sm:$0xff]  ;;  %v275_v14 = vld [vmem:[#allocation13 + $0x18] sm:$0xff]  ;;  %v296_v19 = vld [vmem:[#allocation15 + $0x10] sm:$0xff] }
  0x84   :  { %v171_v38 = vadd.f32 %v167_v31, %v145_v18  ;;  %v172_v41 = vadd.f32 %v168_v34, %v146_v22  ;;  %v173_v42 = vadd.f32 %v169_v35, %v147_v23  ;;  %v183_v43 = vsub.f32 %v179_v32, %v129_v3  ;;  %v267_v3 = vld [vmem:[#allocation12 + $0x8] sm:$0xff]  ;;  %v297_v20 = vld [vmem:[#allocation15 + $0x18] sm:$0xff] }
  0x85   :  { %v184_v44 = vadd.f32 %v180_v36, %v162_v25  ;;  %v185_v45 = vadd.f32 %v181_v39, %v163_v28  ;;  %v186_v46 = vadd.f32 %v182_v40, %v164_v29  ;;  %v188_v47 = vmul.f32 %v180_v36, %v180_v36 }
  0x86   :  { %v189_v48 = vmul.f32 %v181_v39, %v181_v39  ;;  %v187_v49 = vadd.f32 %v183_v43, %v165_v33  ;;  %v190_v50 = vmul.f32 %v182_v40, %v182_v40  ;;  %v191_v51 = vmul.f32 %v183_v43, %v183_v43 }
  0x87   :  { %v196_v52 = vmul.f32 %v184_v44, %v184_v44  ;;  %v192_v53 = vadd.f32 %v188_v47, %v170_v37  ;;  %v197_v55 = vmul.f32 %v185_v45, %v185_v45  ;;  %v198_v56 = vmul.f32 %v186_v46, %v186_v46 }
  0x88   :  { %v193_v54 = vadd.f32 %v189_v48, %v171_v38  ;;  %v194_v57 = vadd.f32 %v190_v50, %v172_v41  ;;  %v195_v58 = vadd.f32 %v191_v51, %v173_v42  ;;  %v199_v59 = vmul.f32 %v187_v49, %v187_v49 }
  0x89   :  { %v200_v60 = vmul.f32 0.25, %v196_v52  ;;  %v201_v61 = vmul.f32 0.25, %v197_v55  ;;  %v202_v62 = vmul.f32 0.25, %v198_v56  ;;  %v276_v15 = vsub.f32 %v272_v0, %v266_v63 }
  0x8a   :  { %v203_v1 = vmul.f32 0.25, %v199_v59  ;;  %v277_v18 = vsub.f32 %v273_v4, %v267_v3  ;;  %v298_v21 = vsub.f32 %v294_v5, %v266_v63  ;;  %v278_v24 = vsub.f32 %v274_v9, %v268_v8 }
  0x8b   :  { %v204_v2 = vsub.f32 %v192_v53, %v200_v60  ;;  %v205_v6 = vsub.f32 %v193_v54, %v201_v61  ;;  %v206_v7 = vsub.f32 %v194_v57, %v202_v62  ;;  %v299_v25 = vsub.f32 %v295_v10, %v267_v3 }
  0x8c   :  { %v207_v11 = vsub.f32 %v195_v58, %v203_v1  ;;  %v279_v28 = vsub.f32 %v275_v14, %v269_v13  ;;  %v284_v29 = vmul.f32 %v276_v15, %v276_v15  ;;  %v300_v31 = vsub.f32 %v296_v19, %v268_v8 }
  0x8d   :  { %v208_v12 = vmul.f32 0.33333334, %v204_v2  ;;  %v209_v16 = vmul.f32 0.33333334, %v205_v6  ;;  %v210_v17 = vmul.f32 0.33333334, %v206_v7  ;;  %v301_v32 = vsub.f32 %v297_v20, %v269_v13 }
  0x8e   :  { %v211_v22 = vmul.f32 0.33333334, %v207_v11  ;;  %v285_v33 = vmul.f32 %v277_v18, %v277_v18  ;;  %v286_v34 = vmul.f32 %v278_v24, %v278_v24  ;;  %v302_v35 = vadd.f32 %v298_v21, %v276_v15 }
  0x8f   :  { %v774_v23 = vmax.f32 %v208_v12, 0.0  ;;  %v776_v26 = vmax.f32 %v209_v16, 0.0  ;;  %v778_v27 = vmax.f32 %v210_v17, 0.0  ;;  %v287_v36 = vmul.f32 %v279_v28, %v279_v28 }
  0x90   :  { %v780_v30 = vmax.f32 %v211_v22, 0.0  ;;  %v303_v37 = vadd.f32 %v299_v25, %v277_v18  ;;  %v304_v39 = vadd.f32 %v300_v31, %v278_v24  ;;  %v305_v40 = vadd.f32 %v301_v32, %v279_v28 }
  0x91   :  { %452 = vrsqrt.f32 %v774_v23  ;;  %vm218_vm0 = vcmp.eq.f32.partialorder %v774_v23, inf  ;;  %vm220_vm1 = vcmp.eq.f32.partialorder %v774_v23, 0.0  ;;  %v221_v38 = vand.u32 2147483648, %v774_v23 }
  0x92   :  { %454 = vrsqrt.f32 %v776_v26  ;;  %vm225_vm2 = vcmp.eq.f32.partialorder %v776_v26, inf  ;;  %vm227_vm3 = vcmp.eq.f32.partialorder %v776_v26, 0.0  ;;  %v306_v41 = vmul.f32 %v298_v21, %v298_v21 }
  0x93   :  { %456 = vrsqrt.f32 %v778_v27  ;;  %v307_v42 = vmul.f32 %v299_v25, %v299_v25  ;;  %v308_v43 = vmul.f32 %v300_v31, %v300_v31  ;;  %v309_v44 = vmul.f32 %v301_v32, %v301_v32 }
  0x94   :  { %458 = vrsqrt.f32 %v780_v30  ;;  %v314_v45 = vmul.f32 %v302_v35, %v302_v35  ;;  %v310_v46 = vadd.f32 %v306_v41, %v284_v29  ;;  %v315_v47 = vmul.f32 %v303_v37, %v303_v37 }
  0x95   :  { %v316_v48 = vmul.f32 %v304_v39, %v304_v39  ;;  %v317_v49 = vmul.f32 %v305_v40, %v305_v40  ;;  %v311_v50 = vadd.f32 %v307_v42, %v285_v33  ;;  %v312_v51 = vadd.f32 %v308_v43, %v286_v34 }
  0x96   :  { %v313_v52 = vadd.f32 %v309_v44, %v287_v36  ;;  %v318_v53 = vmul.f32 0.33333334, %v314_v45  ;;  %v319_v54 = vmul.f32 0.33333334, %v315_v47  ;;  %v228_v57 = vand.u32 2147483648, %v776_v26 }
  0x97   :  { %v320_v55 = vmul.f32 0.33333334, %v316_v48  ;;  %v321_v56 = vmul.f32 0.33333334, %v317_v49  ;;  %vm232_vm4 = vcmp.eq.f32.partialorder %v778_v27, inf  ;;  %vm234_vm5 = vcmp.eq.f32.partialorder %v778_v27, 0.0 }
  0x98   :  { %v322_v58 = vsub.f32 %v310_v46, %v318_v53  ;;  %v235_v60 = vand.u32 2147483648, %v778_v27  ;;  %v323_v61 = vsub.f32 %v311_v50, %v319_v54  ;;  %vm239_vm6 = vcmp.eq.f32.partialorder %v780_v30, inf }
  0x99   :  { %v324_v62 = vsub.f32 %v312_v51, %v320_v55  ;;  %v325_v63 = vsub.f32 %v313_v52, %v321_v56  ;;  %vm241_vm7 = vcmp.eq.f32.partialorder %v780_v30, 0.0  ;;  %v242_v11 = vand.u32 2147483648, %v780_v30 }
  0x9a   :  { %v326_v2 = vmul.f32 0.5, %v322_v58  ;;  %v327_v5 = vmul.f32 0.5, %v323_v61 }
  0x9b   :  { %v453_v59 = vpop.eup %452  ;;  %v328_v6 = vmul.f32 0.5, %v324_v62  ;;  %v329_v7 = vmul.f32 0.5, %v325_v63 }
  0x9c   :  { %v455_v0 = vpop.eup %454  ;;  %v217_v1 = vmul.f32 %v453_v59, %v774_v23  ;;  %v330_v12 = vmax.f32 %v326_v2, 0.0  ;;  %v331_v16 = vmax.f32 %v327_v5, 0.0 }
  0x9d   :  { %v457_v3 = vpop.eup %456  ;;  %v224_v4 = vmul.f32 %v455_v0, %v776_v26  ;;  %v332_v19 = vmax.f32 %v328_v6, 0.0  ;;  %v333_v20 = vmax.f32 %v329_v7, 0.0 }
  0x9e   :  { %v459_v8 = vpop.eup %458  ;;  %v219_v9 = vsel %vm218_vm0, %v774_v23, %v217_v1  ;;  %v231_v10 = vmul.f32 %v457_v3, %v778_v27  ;;  %460 = vrsqrt.f32 %v330_v12  ;;  %vm336_vm8 = vcmp.eq.f32.partialorder %v330_v12, inf }
  0x9f   :  { %v222_v13 = vsel %vm220_vm1, %v221_v38, %v219_v9  ;;  %v226_v14 = vsel %vm225_vm2, %v776_v26, %v224_v4  ;;  %v238_v15 = vmul.f32 %v459_v8, %v780_v30  ;;  %462 = vrsqrt.f32 %v331_v16 }
  0xa0   :  { %v229_v17 = vsel %vm227_vm3, %v228_v57, %v226_v14  ;;  %v233_v18 = vsel %vm232_vm4, %v778_v27, %v231_v10  ;;  %464 = vrsqrt.f32 %v332_v19  ;;  %v339_v29 = vand.u32 2147483648, %v330_v12 }
  0xa1   :  { %v236_v21 = vsel %vm234_vm5, %v235_v60, %v233_v18  ;;  %v240_v22 = vsel %vm239_vm6, %v780_v30, %v238_v15  ;;  %v385_v23 = vadd.f32 %v229_v17, %v222_v13  ;;  %466 = vrsqrt.f32 %v333_v20 }
  0xa2   :  { %v243_v24 = vsel %vm241_vm7, %v242_v11, %v240_v22  ;;  %vm338_vm9 = vcmp.eq.f32.partialorder %v330_v12, 0.0  ;;  %vm343_vm10 = vcmp.eq.f32.partialorder %v331_v16, inf  ;;  %vm345_vm11 = vcmp.eq.f32.partialorder %v331_v16, 0.0 }
  0xa3   :  { %v386_v25 = vadd.f32 %v385_v23, %v236_v21  ;;  %v346_v32 = vand.u32 2147483648, %v331_v16  ;;  %vm350_vm12 = vcmp.eq.f32.partialorder %v332_v19, inf  ;;  %vm352_vm13 = vcmp.eq.f32.partialorder %v332_v19, 0.0 }
  0xa4   :  { %v353_v35 = vand.u32 2147483648, %v332_v19  ;;  %vm357_vm14 = vcmp.eq.f32.partialorder %v333_v20, inf  ;;  %v360_v39 = vand.u32 2147483648, %v333_v20  ;;  %vm359_vm15 = vcmp.eq.f32.partialorder %v333_v20, 0.0 }
  0xa5   :  { %v387_v26 = vadd.f32 %v386_v25, %v243_v24 }
  0xa7   :  { %388 = vadd.xlane.f32.xlu0 %v387_v26 }
  0xa8   :  { %v461_v28 = vpop.eup %460 }
  0xa9   :  { %v335_v27 = vmul.f32 %v461_v28, %v330_v12  ;;  %v463_v31 = vpop.eup %462 }
  0xaa   :  { %v465_v33 = vpop.eup %464  ;;  %v342_v30 = vmul.f32 %v463_v31, %v331_v16 }
  0xab   :  { %v337_v34 = vsel %vm336_vm8, %v330_v12, %v335_v27  ;;  %v467_v36 = vpop.eup %466  ;;  %v349_v38 = vmul.f32 %v465_v33, %v332_v19 }
  0xac   :  { %v340_v37 = vsel %vm338_vm9, %v339_v29, %v337_v34  ;;  %v344_v40 = vsel %vm343_vm10, %v331_v16, %v342_v30  ;;  %v356_v41 = vmul.f32 %v467_v36, %v333_v20 }
  0xad   :  { %v347_v42 = vsel %vm345_vm11, %v346_v32, %v344_v40  ;;  %v351_v43 = vsel %vm350_vm12, %v332_v19, %v349_v38 }
  0xae   :  { %v354_v44 = vsel %vm352_vm13, %v353_v35, %v351_v43  ;;  %v358_v45 = vsel %vm357_vm14, %v333_v20, %v356_v41  ;;  %v402_v46 = vadd.f32 %v347_v42, %v340_v37 }
  0xaf   :  { %v361_v47 = vsel %vm359_vm15, %v360_v39, %v358_v45 }
  0xb0   :  { %v403_v48 = vadd.f32 %v402_v46, %v354_v44 }
  0xb2   :  { %v404_v49 = vadd.f32 %v403_v48, %v361_v47 }
  0xb4   :  { %405 = vadd.xlane.f32.xlu0 %v404_v49 }
 0x134   :  { %v389_v50 = vpop.xlane.xlu0 %388 }
 0x135   :  { %v390_v51 = vrot.slane %v389_v50, 4 }
 0x137   :  { %v391_v52 = vadd.f32 %v390_v51, %v389_v50 }
 0x139   :  { %v392_v53 = vrot.slane %v391_v52, 2 }
 0x13b   :  { %v393_v54 = vadd.f32 %v392_v53, %v391_v52 }
 0x13d   :  { %v394_v55 = vrot.slane %v393_v54, 1 }
 0x13f   :  { %v395_v56 = vadd.f32 %v394_v55, %v393_v54 }
 0x141   :  { %440 = vpush %v395_v56  ;;  %v406_v57 = vpop.xlane.xlu0 %405 }
 0x142   :  { %v407_v58 = vrot.slane %v406_v57, 4 }
 0x144   :  { %v408_v59 = vadd.f32 %v407_v58, %v406_v57 }
 0x146   :  { %v409_v60 = vrot.slane %v408_v59, 2 }
 0x148   :  { %v410_v61 = vadd.f32 %v409_v60, %v408_v59 }
 0x14a   :  { %v411_v62 = vrot.slane %v410_v61, 1 }
 0x14c   :  { %v412_v63 = vadd.f32 %v411_v62, %v410_v61 }
 0x14e   :  { %442 = vpush %v412_v63 }
 0x172   :  { %s441_s6 = spop %440 }
 0x173   :  { %s397_s8 = smul.f32 0.0625, %s441_s6 }
 0x175   :  { %420 = sst [smem:[#allocation16 + $0x1]] %s397_s8 }
 0x17f   :  { %s443_s9 = spop %442 }
 0x180   :  { %s414_s10 = smul.f32 0.0625, %s443_s9 }
 0x182   :  { %s415_s11 = sadd.f32 %s414_s10, %s397_s8 }
 0x183   :  { %422 = sst [smem:[#allocation16 + $0x2]] %s414_s10 }
 0x184   :  { %s416_s0 = smul.f32 0.05, %s415_s11 }
 0x186   :  { %418 = sst [smem:[#allocation16]] %s416_s0 }
 0x187   :  { %631 = shalt.err (!%p628_p2)
}
 0x188   :  { %s649_s16 = smov [#allocation16]  }
 0x189   :  { %430 = dma.smem_to_hbm %s649_s16, 16, %s842_s7, [#allocation6]  }
 0x18a   :  { %640 = dma.done.wait [#allocation6], 16  }
 0x18b   :  { %641 = vsyncadd [#allocation6], 4294967280 }
 0x18c   :  { %434 = sfence }
 0x18d   :  { %435 = vsyncpa [#allocation5], 1 }
 0x18e   :  { %436 = vsyncpa [#allocation8], 1 }
 0x18f   :  { %437 = vsyncpa [#allocation11], 1 }
 0x190   :  { %438 = vsyncpa [#allocation14], 1 }
 0x191   :  { %439 = vsyncpa [#allocation6], 1 }

</bundles_post_ra>
